<compile_context>
chip_gen: v6e
topology: v6e:2x2x1
jax: 0.10.0
libtpu: 0.0.40
codegen_flags: <defaults>
</compile_context>

<pallas_src>
import functools

import jax
import jax.numpy as jnp
from jax.experimental import pallas as pl
from jax.experimental.pallas import tpu as pltpu


def _round_up(n, m):
    return ((n + m - 1) // m) * m


# -----------------------------------------------------------------------------
# Narrow probes (hardware query / feature detection).  These never wrap the real
# FFN pallas_call, so real compile/lowering/VMEM errors are not masked.
# -----------------------------------------------------------------------------

@functools.lru_cache(maxsize=1)
def _vmem_capacity_bytes():
    """Physical VMEM per TensorCore; conservative 64 MiB (v7x) fallback."""
    try:
        return int(pltpu.get_tpu_info().vmem_capacity_bytes)
    except Exception:  # hardware-query probe only
        return 64 * 1024 * 1024


def _vmem_budget_bytes():
    cap = _vmem_capacity_bytes()
    return cap - max(8 * 1024 * 1024, cap // 16)  # leave ~8-16 MiB headroom


@functools.lru_cache(maxsize=1)
def _supports_buffered_blockspec():
    """Does this jax accept pipeline_mode=pl.Buffered(1) on a pallas_call BlockSpec?
    Probed once on a tiny dedicated kernel (cached)."""
    try:
        spec = pl.BlockSpec((8, 128), lambda i: (0, 0), pipeline_mode=pl.Buffered(1))
    except (AttributeError, TypeError, ValueError):
        return False

    def _probe(x_ref, o_ref):
        o_ref[...] = x_ref[...] + 1.0

    try:
        fn = pl.pallas_call(
            _probe,
            out_shape=jax.ShapeDtypeStruct((8, 128), jnp.float32),
            grid_spec=pltpu.PrefetchScalarGridSpec(
                num_scalar_prefetch=0,
                grid=(1,),
                in_specs=[spec],
                out_specs=pl.BlockSpec((8, 128), lambda i: (0, 0)),
            ),
        )
        jax.block_until_ready(fn(jnp.zeros((8, 128), jnp.float32)))
        return True
    except Exception:  # feature probe only; real kernel is never built through this path
        return False


# -----------------------------------------------------------------------------
# Kernel
# -----------------------------------------------------------------------------

def _ffn_kernel(x_ref, w12_ref, w3_ref, o_ref, acc_ref):
    # x_ref   : (TM, Dp)       token tile (compute dtype, bf16 by default)
    # w12_ref : (Dp, 2*TN)     fused [fc1 | fc2] hidden-chunk block, pre-transposed (in, out)
    # w3_ref  : (TN, Dp)       fc3 hidden-chunk block, pre-transposed (in, out)
    # o_ref   : (TM, Dp)       output tile (x.dtype)
    # acc_ref : (TM, Dp) fp32  accumulator over hidden chunks (grid axis 1)
    j = pl.program_id(1)

    @pl.when(j == 0)
    def _init():
        acc_ref[...] = jnp.zeros_like(acc_ref)

    tn = w3_ref.shape[0]
    x = x_ref[...]

    # Fused fc1/fc2: a single MXU pass streams the x tile once; fp32 accumulation.
    h = jnp.dot(x, w12_ref[...], preferred_element_type=jnp.float32)  # (TM, 2*TN)
    h1 = h[:, :tn]
    h2 = h[:, tn:]

    # SiLU(h1) * h2 kept in fp32 (VPU mul / EUP sigmoid; v5e has no bf16 VPU/EUP).
    gated = (h1 * jax.nn.sigmoid(h1)) * h2

    # fc3 contribution of this hidden chunk, accumulated in fp32.
    acc_ref[...] += jnp.dot(gated.astype(w3_ref.dtype), w3_ref[...],
                            preferred_element_type=jnp.float32)

    @pl.when(j == pl.num_programs(1) - 1)
    def _finalize():
        o_ref[...] = acc_ref[...].astype(o_ref.dtype)


# -----------------------------------------------------------------------------
# Planning / call construction
# -----------------------------------------------------------------------------

def _vmem_estimate(dp, tm, tn, cbpe, obpe, w_bufs):
    return (w_bufs * 3 * dp * tn * cbpe        # w12 (dp, 2tn) + w3 (tn, dp) blocks
            + 2 * tm * dp * cbpe               # x tile, double-buffered
            + 2 * tm * dp * obpe               # out tile, double-buffered
            + tm * dp * 4                      # fp32 accumulator scratch
            + tm * (3 * tn + dp) * 4)          # h / gated / partial-dot fp32 live values


def _choose_plan(dp, tm, compute_dtype, block_n):
    """Pick (token tile, hidden chunk) so the footprint fits this chip's VMEM budget."""
    buffered = _supports_buffered_blockspec()
    cbpe = jnp.dtype(compute_dtype).itemsize
    budget = _vmem_budget_bytes()

    def est(tm_, tn_):
        w_bufs = 1 if (tn_ == dp and buffered) else 2
        return _vmem_estimate(dp, tm_, tn_, cbpe, 4, w_bufs)

    if block_n is not None:
        tn = min(dp, max(128, _round_up(block_n, 128)))
        while dp % tn:
            tn -= 128
    else:
        tn = None
        for cand in [dp] + [t for t in (2048, 1024, 512, 256, 128) if t < dp and dp % t == 0]:
            if est(tm, cand) <= budget:
                tn = cand
                break
        if tn is None:
            tn = 128
    # Very large Dp: shrink the token tile before giving up (frees VMEM for weight blocks).
    while est(tm, tn) > budget and tm > 128:
        tm = max(128, tm // 2)
    return tm, tn


def _build_ffn_call(mp, dp, tm, tn, compute_dtype, out_dtype):
    n_tok = mp // tm
    n_hid = dp // tn
    cbpe = jnp.dtype(compute_dtype).itemsize
    obpe = jnp.dtype(out_dtype).itemsize

    # Single-buffer weights only when their block index is constant across the grid
    # (fully resident) and pipeline_mode is supported by this jax.
    single_buf_w = (n_hid == 1) and _supports_buffered_blockspec()
    w_kwargs = {"pipeline_mode": pl.Buffered(1)} if single_buf_w else {}
    w_bufs = 1 if single_buf_w else 2

    vmem_est = _vmem_estimate(dp, tm, tn, cbpe, obpe, w_bufs)
    vmem_limit = int(min(max(int(1.25 * vmem_est), 32 * 1024 * 1024), _vmem_budget_bytes()))

    # Weights are read once per call when resident; once per token tile when hidden-tiled.
    w_reads = 1 if n_hid == 1 else n_tok
    cost = pl.CostEstimate(
        flops=6 * mp * dp * dp,
        transcendentals=mp * dp,
        bytes_accessed=(mp * dp * cbpe + mp * dp * obpe + w_reads * 3 * dp * dp * cbpe),
    )

    return pl.pallas_call(
        _ffn_kernel,
        out_shape=jax.ShapeDtypeStruct((mp, dp), out_dtype),
        grid_spec=pltpu.PrefetchScalarGridSpec(
            num_scalar_prefetch=0,
            grid=(n_tok, n_hid),
            in_specs=[
                pl.BlockSpec((tm, dp), lambda i, j: (i, 0)),                   # x tile
                pl.BlockSpec((dp, 2 * tn), lambda i, j: (0, j), **w_kwargs),   # fused fc1|fc2
                pl.BlockSpec((tn, dp), lambda i, j: (j, 0), **w_kwargs),       # fc3
            ],
            out_specs=pl.BlockSpec((tm, dp), lambda i, j: (i, 0)),
            scratch_shapes=[pltpu.VMEM((tm, dp), jnp.float32)],
        ),
        compiler_params=pltpu.CompilerParams(
            dimension_semantics=("parallel", "arbitrary"),
            vmem_limit_bytes=vmem_limit,
        ),
        cost_estimate=cost,
    )


# -----------------------------------------------------------------------------
# Weight prep (one-time) + public wrappers
# -----------------------------------------------------------------------------

def _prepare_weights(w1, w2, w3, d, dp, tn, compute_dtype):
    """One-time prep: transpose to (in, out), zero-pad to lane-dense Dp, cast to the compute
    dtype, and fuse fc1/fc2 per hidden chunk so each grid step reads one [w1c | w2c] block."""
    cdt = jnp.dtype(compute_dtype)

    def pad_t(w):
        wt = jnp.asarray(w).T.astype(cdt)
        if dp != d:
            wt = jnp.pad(wt, ((0, dp - d), (0, dp - d)))
        return wt

    w1t, w2t, w3t = pad_t(w1), pad_t(w2), pad_t(w3)
    n_hid = dp // tn
    w12t = jnp.concatenate(
        [jnp.concatenate([w1t[:, c * tn:(c + 1) * tn],
                          w2t[:, c * tn:(c + 1) * tn]], axis=1)
         for c in range(n_hid)],
        axis=1)
    return w12t, w3t


def make_feed_forward(w1, w2, w3, *, compute_dtype=jnp.bfloat16, tm=None, block_n=None):
    """Build a SwiGLU feed-forward closure; weight prep happens ONCE here (use at model init).

    w1/w2/w3     : (D, D) in PyTorch nn.Linear layout (out_features, in_features).
    compute_dtype: MXU input dtype (bf16 default; accumulation is always fp32).
    tm           : token-tile rows; block_n: force a hidden-chunk width (multiple of 128).
    """
    d = int(w1.shape[0])
    assert w1.shape == w2.shape == w3.shape == (d, d)
    dp = _round_up(d, 128)

    tm_nominal = tm if tm is not None else (512 if dp <= 1024 else 256)
    tm_nominal = max(16, _round_up(tm_nominal, 16))
    tm_plan, tn = _choose_plan(dp, tm_nominal, compute_dtype, block_n)

    w12t, w3t = _prepare_weights(w1, w2, w3, d, dp, tn, compute_dtype)
    cdt = jnp.dtype(compute_dtype)

    @jax.jit
    def apply(x):
        assert x.shape[-1] == d
        lead = x.shape[:-1]
        m = 1
        for s in lead:
            m *= int(s)
        tm_call = max(16, min(tm_plan, _round_up(m, 16)))
        mp = _round_up(m, tm_call)

        x2d = x.reshape(m, d).astype(cdt)
        if (mp, dp) != (m, d):
            x2d = jnp.pad(x2d, ((0, mp - m), (0, dp - d)))

        out2d = _build_ffn_call(mp, dp, tm_call, tn, compute_dtype, x.dtype)(x2d, w12t, w3t)
        return out2d[:m, :d].reshape(*lead, d)

    return apply


def feed_forward(x, w1, w2, w3, *, compute_dtype=jnp.bfloat16, tm=None, block_n=None):
    """Convenience one-shot wrapper.  Prefer make_feed_forward() so weight prep is not
    re-done (and re-read from HBM) on every call."""
    return make_feed_forward(w1, w2, w3, compute_dtype=compute_dtype,
                             tm=tm, block_n=block_n)(x)


def _reference(x, w1, w2, w3):
    h1 = x @ w1.T
    h2 = x @ w2.T
    return (jax.nn.silu(h1) * h2) @ w3.T


if __name__ == "__main__":
    key = jax.random.PRNGKey(0)

    # ---- Config consistent with the module (embedding_size=32): resident-weight path. ----
    batch, seq, d = 2, 8, 32
    kx, k1, k2, k3, k4 = jax.random.split(key, 5)
    x = jax.random.normal(kx, (batch, seq, d), dtype=jnp.float32)
    scale = 1.0 / (d ** 0.5)
    w1 = jax.random.uniform(k1, (d, d), jnp.float32, -scale, scale)
    w2 = jax.random.uniform(k2, (d, d), jnp.float32, -scale, scale)
    w3 = jax.random.uniform(k3, (d, d), jnp.float32, -scale, scale)
    ref = _reference(x, w1, w2, w3)

    # Default path: bf16 MXU inputs, fp32 accumulation; weights prepped once.
    ffn = make_feed_forward(w1, w2, w3)
    out = jax.block_until_ready(ffn(x))
    assert out.shape == (batch, seq, d) and out.dtype == x.dtype
    assert jnp.allclose(out, ref, atol=5e-2, rtol=5e-2), "bf16 path mismatch vs reference"

    # fp32 compute path of the same kernel.
    out_f32 = jax.block_until_ready(make_feed_forward(w1, w2, w3, compute_dtype=jnp.float32)(x))
    assert jnp.allclose(out_f32, ref, atol=5e-2, rtol=5e-2), "fp32 path mismatch vs reference"

    # ---- Larger D with a forced hidden chunk: exercises the 2-D grid / K-reduction path. ----
    d2 = 256
    kx2, k5, k6, k7 = jax.random.split(k4, 4)
    x2 = jax.random.normal(kx2, (batch, seq, d2), dtype=jnp.float32)
    s2 = 1.0 / (d2 ** 0.5)
    w1b = jax.random.uniform(k5, (d2, d2), jnp.float32, -s2, s2)
    w2b = jax.random.uniform(k6, (d2, d2), jnp.float32, -s2, s2)
    w3b = jax.random.uniform(k7, (d2, d2), jnp.float32, -s2, s2)
    ref2 = _reference(x2, w1b, w2b, w3b)

    out2 = jax.block_until_ready(make_feed_forward(w1b, w2b, w3b, block_n=128)(x2))
    assert out2.shape == (batch, seq, d2)
    assert jnp.allclose(out2, ref2, atol=5e-2, rtol=5e-2), "tiled path mismatch vs reference"

    print("KERNEL_OK")
</pallas_src>

<mosaic_0001>
module attributes {stable_mosaic.version = 11 : i64} {
  func.func @_probe(%arg0: i32, %arg1: memref<8x128xf32, #tpu.memory_space<vmem>>, %arg2: memref<8x128xf32, #tpu.memory_space<vmem>>) attributes {dimension_semantics = [#tpu.dimension_semantics<arbitrary>], iteration_bounds = array<i64: 1>, scalar_prefetch = 0 : i64, scratch_operands = 0 : i64, tpu.core_type = #tpu.core_type<tc>, window_params = [{pipeline_mode = #tpu.pipeline_mode<synchronous>, transform_indices = @transform_0, window_bounds = array<i64: 8, 128>}, {pipeline_mode = #tpu.pipeline_mode<synchronous>, transform_indices = @transform_1, window_bounds = array<i64: 8, 128>}]} {
    %c0 = arith.constant 0 : index
    %c0_0 = arith.constant 0 : index
    %0 = vector.load %arg1[%c0, %c0_0] : memref<8x128xf32, #tpu.memory_space<vmem>>, vector<8x128xf32>
    %cst = arith.constant 1.000000e+00 : f32
    %1 = vector.broadcast %cst : f32 to vector<8x128xf32>
    %2 = arith.addf %0, %1 : vector<8x128xf32>
    %c0_1 = arith.constant 0 : index
    %c0_2 = arith.constant 0 : index
    %3 = vector.load %arg2[%c0_1, %c0_2] : memref<8x128xf32, #tpu.memory_space<vmem>>, vector<8x128xf32>
    tpu.vector_store %arg2[%c0_1, %c0_2], %2 {strides = array<i32>} : memref<8x128xf32, #tpu.memory_space<vmem>>, vector<8x128xf32>,
    return
  }
  func.func @transform_0(%arg0: i32) -> (i32, i32) {
    %c0_i32 = arith.constant 0 : i32
    %c0_i32_0 = arith.constant 0 : i32
    %c0_i32_1 = arith.constant 0 : i32
    return %c0_i32, %c0_i32_0 : i32, i32
  }
  func.func @transform_1(%arg0: i32) -> (i32, i32) {
    %c0_i32 = arith.constant 0 : i32
    %c0_i32_0 = arith.constant 0 : i32
    %c0_i32_1 = arith.constant 0 : i32
    return %c0_i32, %c0_i32_0 : i32, i32
  }
}

module attributes {stable_mosaic.version = 11 : i64} {
  func.func @_ffn_kernel(%arg0: i32, %arg1: i32, %arg2: memref<16x128xbf16, #tpu.memory_space<vmem>>, %arg3: memref<128x256xbf16, #tpu.memory_space<vmem>>, %arg4: memref<128x128xbf16, #tpu.memory_space<vmem>>, %arg5: memref<16x128xf32, #tpu.memory_space<vmem>>, %arg6: memref<16x128xf32, #tpu.memory_space<vmem>>) attributes {dimension_semantics = [#tpu.dimension_semantics<parallel>, #tpu.dimension_semantics<arbitrary>], iteration_bounds = array<i64: 1, 1>, scalar_prefetch = 0 : i64, scratch_operands = 1 : i64, tpu.core_type = #tpu.core_type<tc>, window_params = [{transform_indices = @transform_0, window_bounds = array<i64: 16, 128>}, {transform_indices = @transform_1, window_bounds = array<i64: 128, 256>}, {transform_indices = @transform_2, window_bounds = array<i64: 128, 128>}, {transform_indices = @transform_3, window_bounds = array<i64: 16, 128>}]} {
    %c0_i32 = arith.constant 0 : i32
    %0 = arith.cmpi eq, %arg1, %c0_i32 : i32
    %1 = arith.extui %0 : i1 to i32
    %c0_i32_0 = arith.constant 0 : i32
    %2 = arith.cmpi ne, %1, %c0_i32_0 : i32
    scf.if %2 {
      %cst_14 = arith.constant 0.000000e+00 : f32
      %24 = vector.broadcast %cst_14 : f32 to vector<16x128xf32>
      %c0_15 = arith.constant 0 : index
      %c0_16 = arith.constant 0 : index
      %25 = vector.load %arg6[%c0_15, %c0_16] : memref<16x128xf32, #tpu.memory_space<vmem>>, vector<16x128xf32>
      tpu.vector_store %arg6[%c0_15, %c0_16], %24 {strides = array<i32>} : memref<16x128xf32, #tpu.memory_space<vmem>>, vector<16x128xf32>,
    } else {
    }
    %c0 = arith.constant 0 : index
    %c0_1 = arith.constant 0 : index
    %3 = vector.load %arg2[%c0, %c0_1] : memref<16x128xbf16, #tpu.memory_space<vmem>>, vector<16x128xbf16>
    %c0_2 = arith.constant 0 : index
    %c0_3 = arith.constant 0 : index
    %4 = vector.load %arg3[%c0_2, %c0_3] : memref<128x256xbf16, #tpu.memory_space<vmem>>, vector<128x256xbf16>
    %cst = arith.constant dense<0.000000e+00> : vector<16x256xf32>
    %5 = tpu.matmul %3, %4, %cst {dimension_numbers = #tpu.dot_dimension_numbers<[1], [0], [0], [1], [0, 0, 1, 1], [], []>} : vector<16x128xbf16>, vector<128x256xbf16>, vector<16x256xf32> -> vector<16x256xf32>
    %6 = vector.extract_strided_slice %5 {offsets = [0, 0], sizes = [16, 128], strides = [1, 1]} : vector<16x256xf32> to vector<16x128xf32>
    %7 = vector.extract_strided_slice %5 {offsets = [0, 128], sizes = [16, 128], strides = [1, 1]} : vector<16x256xf32> to vector<16x128xf32>
    %8 = arith.negf %6 : vector<16x128xf32>
    %9 = math.exp %8 : vector<16x128xf32>
    %cst_4 = arith.constant 1.000000e+00 : f32
    %10 = vector.broadcast %cst_4 : f32 to vector<16x128xf32>
    %11 = arith.addf %10, %9 : vector<16x128xf32>
    %12 = arith.divf %10, %11 : vector<16x128xf32>
    %13 = arith.mulf %6, %12 : vector<16x128xf32>
    %14 = arith.mulf %13, %7 : vector<16x128xf32>
    %c0_5 = arith.constant 0 : index
    %c0_6 = arith.constant 0 : index
    %15 = vector.load %arg6[%c0_5, %c0_6] : memref<16x128xf32, #tpu.memory_space<vmem>>, vector<16x128xf32>
    %16 = arith.truncf %14 : vector<16x128xf32> to vector<16x128xbf16>
    %c0_7 = arith.constant 0 : index
    %c0_8 = arith.constant 0 : index
    %17 = vector.load %arg4[%c0_7, %c0_8] : memref<128x128xbf16, #tpu.memory_space<vmem>>, vector<128x128xbf16>
    %cst_9 = arith.constant dense<0.000000e+00> : vector<16x128xf32>
    %18 = tpu.matmul %16, %17, %cst_9 {dimension_numbers = #tpu.dot_dimension_numbers<[1], [0], [0], [1], [0, 0, 1, 1], [], []>} : vector<16x128xbf16>, vector<128x128xbf16>, vector<16x128xf32> -> vector<16x128xf32>
    %19 = arith.addf %15, %18 : vector<16x128xf32>
    %c0_10 = arith.constant 0 : index
    %c0_11 = arith.constant 0 : index
    %20 = vector.load %arg6[%c0_10, %c0_11] : memref<16x128xf32, #tpu.memory_space<vmem>>, vector<16x128xf32>
    tpu.vector_store %arg6[%c0_10, %c0_11], %19 {strides = array<i32>} : memref<16x128xf32, #tpu.memory_space<vmem>>, vector<16x128xf32>,
    %c0_i32_12 = arith.constant 0 : i32
    %21 = arith.cmpi eq, %arg1, %c0_i32_12 : i32
    %22 = arith.extui %21 : i1 to i32
    %c0_i32_13 = arith.constant 0 : i32
    %23 = arith.cmpi ne, %22, %c0_i32_13 : i32
    scf.if %23 {
      %c0_14 = arith.constant 0 : index
      %c0_15 = arith.constant 0 : index
      %24 = vector.load %arg6[%c0_14, %c0_15] : memref<16x128xf32, #tpu.memory_space<vmem>>, vector<16x128xf32>
      %c0_16 = arith.constant 0 : index
      %c0_17 = arith.constant 0 : index
      %25 = vector.load %arg5[%c0_16, %c0_17] : memref<16x128xf32, #tpu.memory_space<vmem>>, vector<16x128xf32>
      tpu.vector_store %arg5[%c0_16, %c0_17], %24 {strides = array<i32>} : memref<16x128xf32, #tpu.memory_space<vmem>>, vector<16x128xf32>,
    } else {
    }
    return
  }
  func.func @transform_0(%arg0: i32, %arg1: i32) -> (i32, i32) {
    %c0_i32 = arith.constant 0 : i32
    %c0_i32_0 = arith.constant 0 : i32
    return %arg0, %c0_i32 : i32, i32
  }
  func.func @transform_1(%arg0: i32, %arg1: i32) -> (i32, i32) {
    %c0_i32 = arith.constant 0 : i32
    %c0_i32_0 = arith.constant 0 : i32
    return %c0_i32, %arg1 : i32, i32
  }
  func.func @transform_2(%arg0: i32, %arg1: i32) -> (i32, i32) {
    %c0_i32 = arith.constant 0 : i32
    %c0_i32_0 = arith.constant 0 : i32
    return %arg1, %c0_i32 : i32, i32
  }
  func.func @transform_3(%arg0: i32, %arg1: i32) -> (i32, i32) {
    %c0_i32 = arith.constant 0 : i32
    %c0_i32_0 = arith.constant 0 : i32
    return %arg0, %c0_i32 : i32, i32
  }
}

</mosaic_0001>

<bundles_post_ra>
// kernel: tpu_custom_call.1
= control target key start
LH: loop header
LB: loop body
LE: loop exit
PB: predicated region body
PF: predicated region fallthrough
CT: control target
= control target key end

     0   :  { %6 = vsyncpa [#allocation3], 0  ;;  %s103_s0 = inlined_call_operand.hbm [shape: f32[8,128], index: 0, kind: input, shape index: {}]   ;;  %s104_s1 = inlined_call_operand.hbm [shape: f32[8,128], index: 1, kind: output, shape index: {}]  }
   0x1   :  { %7 = vsyncpa [#allocation4], 0  ;;  %s85_s6 = smov [#allocation2]  }
   0x2   :  { %s14_s7 = sshll.u32 %s85_s6, 4  ;;  %s15_s7 = int_to_ptr.vmem [resolvable:$true] %s14_s7 }
   0x3   :  { %s49_s8 = scalar_lea.vmem %s15_s7, 128  ;;  %p54_p1 = scmp.lt.s32.totalorder %s15_s7, %s15_s7 }
   0x4   :  { %p50_p0 = scmp.ne.s32.totalorder %s15_s7, %s49_s8  ;;  %p55_p2 = scmp.lt.s32.totalorder %s49_s8, %s49_s8 }
   0x6   :  { %p56_p3 = por %p55_p2, %p54_p1 }
   0x8   :  { %p57_p4 = pnand %p56_p3, %p50_p0 }
   0xa   :  { %60 = shalt.err (!%p57_p4)
}
   0xb   :  { %17 = dma.hbm_to_vmem [thread:$0]  %s103_s0, 128, %s15_s7, [#allocation3]  }
   0xc   :  { %81 = dma.done.wait [#allocation3], 128  }
   0xd   :  { %82 = vsyncadd [#allocation3], 4294967168  ;;  %s86_s11 = smov [#allocation5]   ;;  %v21_v0 = vld [vmem:[#allocation2] sm:$0xff] }
   0xe   :  { %s30_s12 = sshll.u32 %s86_s11, 4  ;;  %v22_v1 = vadd.f32 1.0, %v21_v0  ;;  %s31_s12 = int_to_ptr.vmem [resolvable:$true] %s30_s12 }
   0xf   :  { %s61_s13 = scalar_lea.vmem %s31_s12, 128  ;;  %p66_p6 = scmp.lt.s32.totalorder %s31_s12, %s31_s12 }
  0x10   :  { %23 = vst [vmem:[#allocation5] sm:$0xff] %v22_v1  ;;  %p62_p5 = scmp.ne.s32.totalorder %s31_s12, %s61_s13  ;;  %p67_p7 = scmp.lt.s32.totalorder %s61_s13, %s61_s13 }
  0x12   :  { %p68_p8 = por %p67_p7, %p66_p6 }
  0x14   :  { %p69_p9 = pnand %p68_p8, %p62_p5 }
  0x16   :  { %72 = shalt.err (!%p69_p9)
}
  0x17   :  { %33 = dma.vmem_to_hbm [thread:$0]  %s31_s12, 128, %s104_s1, [#allocation4]  }
  0x18   :  { %83 = dma.done.wait [#allocation4], 128  }
  0x19   :  { %84 = vsyncadd [#allocation4], 4294967168 }
  0x1a   :  { %37 = vsyncpa [#allocation3], 1 }
  0x1b   :  { %38 = vsyncpa [#allocation4], 1 }

// kernel: apply.1
= control target key start
LH: loop header
LB: loop body
LE: loop exit
PB: predicated region body
PF: predicated region fallthrough
CT: control target
= control target key end

     0   :  { %8 = vsyncpa [#allocation4], 0  ;;  %s531_s0 = inlined_call_operand.vmem [shape: bf16[16,128], index: 0, kind: input, shape index: {}]   ;;  %s532_s1 = inlined_call_operand.hbm [shape: bf16[128,256], index: 1, kind: input, shape index: {}]   ;;  %s533_s2 = inlined_call_operand.hbm [shape: bf16[128,128], index: 2, kind: input, shape index: {}]   ;;  %s534_s3 = inlined_call_operand.vmem [shape: f32[16,128], index: 3, kind: output, shape index: {}]  }
   0x1   :  { %9 = vsyncpa [#allocation6], 0  ;;  %s487_s12 = smov [#allocation3]  }
   0x2   :  { %s17_s13 = sshll.u32 %s487_s12, 4  ;;  %s18_s13 = int_to_ptr.vmem [resolvable:$true] %s17_s13 }
   0x3   :  { %s451_s14 = scalar_lea.vmem %s18_s13, 2048  ;;  %p456_p1 = scmp.lt.s32.totalorder %s18_s13, %s18_s13 }
   0x4   :  { %p452_p0 = scmp.ne.s32.totalorder %s18_s13, %s451_s14  ;;  %p457_p2 = scmp.lt.s32.totalorder %s451_s14, %s451_s14 }
   0x6   :  { %p458_p3 = por %p457_p2, %p456_p1 }
   0x8   :  { %p459_p4 = pnand %p458_p3, %p452_p0 }
   0xa   :  { %462 = shalt.err (!%p459_p4)
}
   0xb   :  { %s488_s15 = smov 128   ;;  %s489_s16 = smov 8  }
   0xc   :  { %23 = dma.hbm_to_vmem [thread:$0]  %s532_s1, 2048, %s18_s13, [#allocation4], %s488_s15, %s488_s15, %s489_s16  }
   0xd   :  { %s490_s19 = smov [#allocation5]  }
   0xe   :  { %s29_s20 = sshll.u32 %s490_s19, 4  ;;  %s30_s20 = int_to_ptr.vmem [resolvable:$true] %s29_s20 }
   0xf   :  { %s471_s21 = scalar_lea.vmem %s30_s20, 1024  ;;  %p476_p6 = scmp.lt.s32.totalorder %s30_s20, %s30_s20 }
  0x10   :  { %p472_p5 = scmp.ne.s32.totalorder %s30_s20, %s471_s21  ;;  %p477_p7 = scmp.lt.s32.totalorder %s471_s21, %s471_s21 }
  0x12   :  { %p478_p8 = por %p477_p7, %p476_p6 }
  0x14   :  { %p479_p9 = pnand %p478_p8, %p472_p5 }
  0x16   :  { %482 = shalt.err (!%p479_p9)
}
  0x17   :  { %s491_s22 = smov 64   ;;  %s492_s23 = smov 4  }
  0x18   :  { %35 = dma.hbm_to_vmem [thread:$0]  %s533_s2, 1024, %s30_s20, [#allocation6], %s491_s22, %s491_s22, %s492_s23  }
  0x19   :  { %483 = dma.done.wait [#allocation4], 2048  }
  0x1a   :  { %484 = vsyncadd [#allocation4], 4294965248 }
  0x1b   :  { %485 = dma.done.wait [#allocation6], 1024  }
  0x1c   :  { %486 = vsyncadd [#allocation6], 4294966272  ;;  %v493_v0 = vmov 0   ;;  %v402_v1 = vld [vmem:[#allocation3 + $0x74] ss:$8 sps:$4 sm:$0xff]   ;;  %v426_v17 = vld [vmem:[%s531_s0] sm:$0xff]  }
  0x1d   :  { %185 = vmatprep.mubr.bf16.mxu0 %v493_v0  ;;  %v404_v2 = vld [vmem:[#allocation3 + $0x70] ss:$8 sps:$4 sm:$0xff]   ;;  %153 = vmatprep.subr.bf16.mxu0 %v402_v1  ;;  %v405_v3 = vld [vmem:[#allocation3 + $0x64] ss:$8 sps:$4 sm:$0xff]   ;;  %v407_v4 = vld [vmem:[#allocation3 + $0x60] ss:$8 sps:$4 sm:$0xff]  }
  0x1e   :  { %154 = vmatpush1.bf16.msra.mxu0 %v404_v2  ;;  %v408_v5 = vld [vmem:[#allocation3 + $0x54] ss:$8 sps:$4 sm:$0xff]   ;;  %v410_v6 = vld [vmem:[#allocation3 + $0x50] ss:$8 sps:$4 sm:$0xff]   ;;  %v411_v7 = vld [vmem:[#allocation3 + $0x44] ss:$8 sps:$4 sm:$0xff]  }
  0x1f   :  { %155 = vmatprep.subr.bf16.mxu0 %v405_v3  ;;  %v413_v8 = vld [vmem:[#allocation3 + $0x40] ss:$8 sps:$4 sm:$0xff]   ;;  %v414_v9 = vld [vmem:[#allocation3 + $0x34] ss:$8 sps:$4 sm:$0xff]   ;;  %v416_v10 = vld [vmem:[#allocation3 + $0x30] ss:$8 sps:$4 sm:$0xff]  }
  0x20   :  { %v417_v11 = vld [vmem:[#allocation3 + $0x24] ss:$8 sps:$4 sm:$0xff]   ;;  %v419_v12 = vld [vmem:[#allocation3 + $0x20] ss:$8 sps:$4 sm:$0xff]   ;;  %v420_v13 = vld [vmem:[#allocation3 + $0x14] ss:$8 sps:$4 sm:$0xff]  }
  0x21   :  { %v422_v14 = vld [vmem:[#allocation3 + $0x10] ss:$8 sps:$4 sm:$0xff]   ;;  %v423_v15 = vld [vmem:[#allocation3 + $0x4] ss:$8 sps:$4 sm:$0xff]   ;;  %v425_v16 = vld [vmem:[#allocation3] ss:$8 sps:$4 sm:$0xff]  }
  0x22   :  { %156 = vmatpush1.bf16.msra.mxu0 %v407_v4  ;;  %v427_v18 = vld [vmem:[#allocation5 + $0x38] sm:$0xff]   ;;  %v494_v19 = vmov 0.0   ;;  %v428_v20 = vld [vmem:[#allocation5 + $0x30] sm:$0xff]   ;;  %v429_v21 = vld [vmem:[#allocation5 + $0x28] sm:$0xff]   ;;  %vm495_vm0 = vmmov 0  }
  0x23   :  { %157 = vmatprep.subr.bf16.mxu0 %v408_v5  ;;  %373 = vmatprep.subr.bf16.mxu1 %v494_v19  ;;  %v430_v22 = vld [vmem:[#allocation5 + $0x20] sm:$0xff]   ;;  %v431_v23 = vld [vmem:[#allocation5 + $0x18] sm:$0xff]   ;;  %v432_v24 = vld [vmem:[#allocation5 + $0x10] sm:$0xff]  }
  0x24   :  { %374 = vmatpush3.bf16.msra.mxu1 %v427_v18  ;;  %v433_v25 = vld [vmem:[#allocation5 + $0x8] sm:$0xff]   ;;  %v434_v26 = vld [vmem:[#allocation5] sm:$0xff]   ;;  %389 = vmatprep.mubr.msk.bf16.mxu1 %vm495_vm0, %v494_v19 }
  0x25   :  { %375 = vmatprep.subr.bf16.mxu1 %v494_v19 }
  0x26   :  { %158 = vmatpush1.bf16.msra.mxu0 %v410_v6 }
  0x27   :  { %159 = vmatprep.subr.bf16.mxu0 %v411_v7 }
  0x28   :  { %376 = vmatpush3.bf16.msra.mxu1 %v428_v20 }
  0x29   :  { %377 = vmatprep.subr.bf16.mxu1 %v494_v19 }
  0x2a   :  { %160 = vmatpush1.bf16.msra.mxu0 %v413_v8 }
  0x2b   :  { %161 = vmatprep.subr.bf16.mxu0 %v414_v9 }
  0x2c   :  { %378 = vmatpush3.bf16.msra.mxu1 %v429_v21 }
  0x2d   :  { %379 = vmatprep.subr.bf16.mxu1 %v494_v19 }
  0x2e   :  { %162 = vmatpush1.bf16.msra.mxu0 %v416_v10 }
  0x2f   :  { %163 = vmatprep.subr.bf16.mxu0 %v417_v11 }
  0x30   :  { %380 = vmatpush3.bf16.msra.mxu1 %v430_v22 }
  0x31   :  { %381 = vmatprep.subr.bf16.mxu1 %v494_v19 }
  0x32   :  { %164 = vmatpush1.bf16.msra.mxu0 %v419_v12 }
  0x33   :  { %165 = vmatprep.subr.bf16.mxu0 %v420_v13 }
  0x34   :  { %382 = vmatpush3.bf16.msra.mxu1 %v431_v23 }
  0x35   :  { %383 = vmatprep.subr.bf16.mxu1 %v494_v19 }
  0x36   :  { %166 = vmatpush1.bf16.msra.mxu0 %v422_v14 }
  0x37   :  { %167 = vmatprep.subr.bf16.mxu0 %v423_v15 }
  0x38   :  { %384 = vmatpush3.bf16.msra.mxu1 %v432_v24 }
  0x39   :  { %385 = vmatprep.subr.bf16.mxu1 %v494_v19 }
  0x3a   :  { %168 = vmatpush1.bf16.msra.mxu0 %v425_v16 }
  0x3c   :  { %386 = vmatpush3.bf16.msra.mxu1 %v433_v25 }
  0x3d   :  { %186 = vmatmul.mubr.bf16.vlgmr.msra.gmra.mxu0 %v426_v17  ;;  %387 = vmatprep.subr.bf16.mxu1 %v494_v19 }
  0x40   :  { %388 = vmatpush3.bf16.msra.mxu1 %v434_v26 }
  0xfd   :  { %v187_v27 = vpop.f32.mrf.mxu0 }
  0xfe   :  { %v354_v28 = vmul.f32 -1.442695, %v187_v27 }
  0xff   :  { %v189_v29 = vpop.f32.mrf.mxu0 }
 0x100   :  { %435 = vpow2.f32 %v354_v28 }
 0x101   :  { %v191_v30 = vpop.f32.mrf.mxu0 }
 0x102   :  { %v355_v31 = vmul.f32 -1.442695, %v191_v30 }
 0x103   :  { %v193_v40 = vpop.f32.mrf.mxu0 }
 0x104   :  { %437 = vpow2.f32 %v355_v31 }
 0x10d   :  { %v436_v32 = vpop.eup %435 }
 0x10e   :  { %v202_v33 = vadd.f32 1.0, %v436_v32 }
 0x110   :  { %439 = vrcp.f32 %v202_v33 }
 0x111   :  { %v438_v34 = vpop.eup %437 }
 0x112   :  { %v203_v35 = vadd.f32 1.0, %v438_v34 }
 0x114   :  { %441 = vrcp.f32 %v203_v35 }
 0x11d   :  { %v440_v36 = vpop.eup %439 }
 0x11e   :  { %v208_v37 = vmul.f32 %v440_v36, %v187_v27 }
 0x120   :  { %v210_v41 = vmul.f32 %v208_v37, %v189_v29 }
 0x121   :  { %v442_v38 = vpop.eup %441 }
 0x122   :  { %v209_v39 = vmul.f32 %v442_v38, %v191_v30 }
 0x124   :  { %v211_v42 = vmul.f32 %v209_v39, %v193_v40 }
 0x126   :  { %v214_v43 = vpack.c.bf16 %v211_v42, %v210_v41 }
 0x128   :  { %390 = vmatmul.mubr.bf16.vlgmr.msra.gmra.mxu1 %v214_v43 }
 0x1e8   :  { %v313_v44 = vpop.f32.mrf.mxu1 }
 0x1e9   :  { %329 = vst [vmem:[%s534_s3] sm:$0xff] %v313_v44 }
 0x1ea   :  { %v391_v45 = vpop.f32.mrf.mxu1 }
 0x1ec   :  { %v316_v46 = vpop.f32.mrf.mxu1 }
 0x1ed   :  { %330 = vst [vmem:[%s534_s3 + $0x8] sm:$0xff] %v316_v46 }
 0x1ee   :  { %v392_v47 = vpop.f32.mrf.mxu1 }
 0x1ef   :  { %335 = vsyncpa [#allocation4], 1 }
 0x1f0   :  { %336 = vsyncpa [#allocation6], 1 }

</bundles_post_ra>
